<compile_context>
chip_gen: v7x
topology: tpu7x:2x2x1
jax: 0.10.0
libtpu: 0.0.40
codegen_flags: <defaults>
</compile_context>

<pallas_src>
import functools

import jax
import jax.numpy as jnp
import numpy as np
from jax import lax
from jax.experimental import pallas as pl
from jax.experimental.pallas import tpu as pltpu

_MIB = 1024 * 1024


def _round_up(x: int, m: int) -> int:
    return (x + m - 1) // m * m


# ---------------------------------------------------------------------------
# Path A1: VMEM-resident table, one-hot MXU gather (small vocab).
#   ids_ref : VMEM (tile, 1) int32
#   w_ref   : VMEM (V, D)        (resident, single-buffered)
#   out_ref : VMEM (tile, D)
# ---------------------------------------------------------------------------
def _onehot_kernel(ids_ref, w_ref, out_ref):
    tile = out_ref.shape[0]
    V = w_ref.shape[0]
    iota = lax.broadcasted_iota(jnp.int32, (tile, V), 1)
    onehot = (iota == ids_ref[...]).astype(w_ref.dtype)
    out_ref[...] = jnp.dot(
        onehot, w_ref[...], preferred_element_type=jnp.float32
    ).astype(out_ref.dtype)


# ---------------------------------------------------------------------------
# Path A2: VMEM-resident table, row gather via dynamic sublane slices.
#   ids_ref : SMEM (1, tile) int32   (per-step block)
#   w_ref   : VMEM (V, D)            (resident, single-buffered)
#   out_ref : VMEM (tile, D)
# ---------------------------------------------------------------------------
def _rowgather_kernel(ids_ref, w_ref, out_ref, *, tile):
    n_groups = tile // 8

    def body(g, carry):
        base = pl.multiple_of(g * 8, 8)
        rows = [w_ref[pl.ds(ids_ref[0, base + k], 1), :] for k in range(8)]
        out_ref[pl.ds(base, 8), :] = jnp.concatenate(rows, axis=0)
        return carry

    lax.fori_loop(0, n_groups, body, 0, unroll=2)


# ---------------------------------------------------------------------------
# Path B: table too large for VMEM -> per-row DMA gather straight into the
# output block (weight stays in HBM).
#   ids_ref : SMEM (1, gtile) int32
#   w_hbm   : HBM  (V, D)        (memory_space=pl.ANY)
#   out_ref : VMEM (gtile, D)
#   sems    : DMA semaphores (gtile,)
# ---------------------------------------------------------------------------
def _dma_gather_kernel(ids_ref, w_hbm, out_ref, sems, *, gtile):
    for k in range(gtile):
        pltpu.make_async_copy(
            w_hbm.at[pl.ds(ids_ref[0, k], 1), :],
            out_ref.at[pl.ds(k, 1), :],
            sems.at[k],
        ).start()
    for k in range(gtile):
        pltpu.make_async_copy(
            w_hbm.at[pl.ds(ids_ref[0, k], 1), :],
            out_ref.at[pl.ds(k, 1), :],
            sems.at[k],
        ).wait()


# ---------------------------------------------------------------------------
# Wrapper
# ---------------------------------------------------------------------------
def embedding_forward(
    ids,
    weight,
    *,
    tile=256,                       # tokens per grid step (resident path)
    gtile=32,                       # tokens per grid step (DMA fallback)
    onehot_max_vocab=1024,          # one-hot MXU gather threshold
    resident_budget_bytes=44 * _MIB,  # sized for v7x: 64 MiB VMEM per TC
    vmem_limit_bytes=48 * _MIB,
):
    """ids: int array (...,); weight: (V, D). Returns (*ids.shape, D)."""
    orig_shape = ids.shape
    V, D = weight.shape
    dtype = weight.dtype
    itemsize = jnp.dtype(dtype).itemsize

    # PyTorch raises on out-of-range ids; we clamp so the on-device gather
    # never walks off the table (documented behavioral divergence).
    flat_ids = jnp.clip(ids.reshape(-1).astype(jnp.int32), 0, V - 1)
    n = int(flat_ids.shape[0])

    # Don't over-pad tiny sequences; keep the tile a multiple of 8.
    tile = min(tile, _round_up(max(n, 1), 8))

    table_bytes = V * D * itemsize
    out_block_bytes = tile * D * itemsize
    resident_ok = (table_bytes + 2 * out_block_bytes + 4 * _MIB) <= resident_budget_bytes

    if resident_ok:
        # ---- Path A: VMEM-resident table ----
        n_pad = _round_up(max(n, 1), tile)
        ids_p = jnp.pad(flat_ids, (0, n_pad - n)) if n_pad != n else flat_ids
        n_tiles = n_pad // tile

        cost = pl.CostEstimate(
            flops=0,
            transcendentals=0,
            bytes_accessed=table_bytes + n_pad * D * itemsize + 4 * n_pad,
        )
        cparams = pltpu.CompilerParams(
            dimension_semantics=("parallel",),
            vmem_limit_bytes=vmem_limit_bytes,
        )
        # Constant block index + single buffer: table is DMA'd to VMEM once.
        table_spec = pl.BlockSpec((V, D), lambda i: (0, 0),
                                  pipeline_mode=pl.Buffered(1))

        if V <= onehot_max_vocab:
            kernel = _onehot_kernel
            ids_in = ids_p.reshape(n_pad, 1)
            ids_spec = pl.BlockSpec((tile, 1), lambda i: (i, 0))
        else:
            kernel = functools.partial(_rowgather_kernel, tile=tile)
            ids_in = ids_p.reshape(n_tiles, tile)
            ids_spec = pl.BlockSpec((1, tile), lambda i: (i, 0),
                                    memory_space=pltpu.MemorySpace.SMEM)

        out = pl.pallas_call(
            kernel,
            out_shape=jax.ShapeDtypeStruct((n_pad, D), dtype),
            grid_spec=pltpu.PrefetchScalarGridSpec(
                num_scalar_prefetch=0,
                grid=(n_tiles,),
                in_specs=[ids_spec, table_spec],
                out_specs=pl.BlockSpec((tile, D), lambda i: (i, 0)),
            ),
            compiler_params=cparams,
            cost_estimate=cost,
        )(ids_in, weight)
    else:
        # ---- Path B: DMA-gather fallback (table stays in HBM) ----
        n_pad = _round_up(max(n, 1), gtile)
        ids_p = jnp.pad(flat_ids, (0, n_pad - n)) if n_pad != n else flat_ids
        n_steps = n_pad // gtile

        cost = pl.CostEstimate(
            flops=0,
            transcendentals=0,
            bytes_accessed=2 * n_pad * D * itemsize + 4 * n_pad,
        )
        out = pl.pallas_call(
            functools.partial(_dma_gather_kernel, gtile=gtile),
            out_shape=jax.ShapeDtypeStruct((n_pad, D), dtype),
            grid_spec=pltpu.PrefetchScalarGridSpec(
                num_scalar_prefetch=0,
                grid=(n_steps,),
                in_specs=[
                    pl.BlockSpec((1, gtile), lambda i: (i, 0),
                                 memory_space=pltpu.MemorySpace.SMEM),
                    pl.BlockSpec(memory_space=pl.ANY),
                ],
                out_specs=pl.BlockSpec((gtile, D), lambda i: (i, 0)),
                scratch_shapes=[pltpu.SemaphoreType.DMA((gtile,))],
            ),
            compiler_params=pltpu.CompilerParams(
                dimension_semantics=("parallel",),
                vmem_limit_bytes=32 * _MIB,
            ),
            cost_estimate=cost,
        )(ids_p.reshape(n_steps, gtile), weight)

    return out[:n, :].reshape(*orig_shape, D)


if __name__ == "__main__":
    # --- Test 1: module-sized shapes; small vocab -> resident one-hot path ---
    num_embeddings, embedding_dim = 64, 128
    batch, seq = 2, 8
    key = jax.random.PRNGKey(0)
    k_w, k_ids = jax.random.split(key)

    weight = jax.random.normal(k_w, (num_embeddings, embedding_dim),
                               dtype=jnp.float32)
    ids = jax.random.randint(k_ids, (batch, seq), 0, num_embeddings,
                             dtype=jnp.int32)

    out = jax.block_until_ready(embedding_forward(ids, weight))
    ref = weight[ids.reshape(-1)].reshape(batch, seq, embedding_dim)
    np.testing.assert_allclose(np.asarray(out), np.asarray(ref), rtol=0, atol=0)
    assert out.shape == (batch, seq, embedding_dim)
    assert out.dtype == jnp.float32

    # --- Test 2: larger vocab, D not a multiple of 128, >2D ids
    #             -> resident row-gather path (no padding copies needed) ---
    V2, D2 = 2048, 96
    w2 = jax.random.normal(jax.random.PRNGKey(1), (V2, D2), dtype=jnp.float32)
    ids2 = jax.random.randint(jax.random.PRNGKey(2), (3, 2, 5), 0, V2,
                              dtype=jnp.int32)
    out2 = jax.block_until_ready(embedding_forward(ids2, w2))
    ref2 = w2[ids2.reshape(-1)].reshape(3, 2, 5, D2)
    np.testing.assert_allclose(np.asarray(out2), np.asarray(ref2),
                               rtol=0, atol=0)

    # --- Test 3: force the DMA-gather fallback path and validate it ---
    out3 = jax.block_until_ready(
        embedding_forward(ids2, w2, resident_budget_bytes=0))
    np.testing.assert_allclose(np.asarray(out3), np.asarray(ref2),
                               rtol=0, atol=0)

    print("KERNEL_OK")
</pallas_src>

<mosaic_0001>
module attributes {stable_mosaic.version = 11 : i64} {
  func.func @_onehot_kernel(%arg0: i32, %arg1: memref<16x1xi32, #tpu.memory_space<vmem>>, %arg2: memref<64x128xf32, #tpu.memory_space<vmem>>, %arg3: memref<16x128xf32, #tpu.memory_space<vmem>>) attributes {dimension_semantics = [#tpu.dimension_semantics<parallel>], iteration_bounds = array<i64: 1>, scalar_prefetch = 0 : i64, scratch_operands = 0 : i64, tpu.core_type = #tpu.core_type<tc>, window_params = [{transform_indices = @transform_0, window_bounds = array<i64: 16, 1>}, {pipeline_mode = #tpu.pipeline_mode<synchronous>, transform_indices = @transform_1, window_bounds = array<i64: 64, 128>}, {transform_indices = @transform_2, window_bounds = array<i64: 16, 128>}]} {
    %0 = tpu.iota {dimensions = array<i32: 1>} : vector<16x64xi32>
    %c0 = arith.constant 0 : index
    %c0_0 = arith.constant 0 : index
    %1 = vector.load %arg1[%c0, %c0_0] : memref<16x1xi32, #tpu.memory_space<vmem>>, vector<16x1xi32>
    %2 = vector.broadcast %1 : vector<16x1xi32> to vector<16x64xi32>
    %3 = arith.cmpi eq, %0, %2 : vector<16x64xi32>
    %4 = arith.extui %3 : vector<16x64xi1> to vector<16x64xi32>
    %5 = arith.sitofp %4 : vector<16x64xi32> to vector<16x64xf32>
    %c0_1 = arith.constant 0 : index
    %c0_2 = arith.constant 0 : index
    %6 = vector.load %arg2[%c0_1, %c0_2] : memref<64x128xf32, #tpu.memory_space<vmem>>, vector<64x128xf32>
    %cst = arith.constant dense<0.000000e+00> : vector<16x128xf32>
    %7 = tpu.matmul %5, %6, %cst {dimension_numbers = #tpu.dot_dimension_numbers<[1], [0], [0], [1], [0, 0, 1, 1], [], []>} : vector<16x64xf32>, vector<64x128xf32>, vector<16x128xf32> -> vector<16x128xf32>
    %c0_3 = arith.constant 0 : index
    %c0_4 = arith.constant 0 : index
    %8 = vector.load %arg3[%c0_3, %c0_4] : memref<16x128xf32, #tpu.memory_space<vmem>>, vector<16x128xf32>
    tpu.vector_store %arg3[%c0_3, %c0_4], %7 {strides = array<i32>} : memref<16x128xf32, #tpu.memory_space<vmem>>, vector<16x128xf32>,
    return
  }
  func.func @transform_0(%arg0: i32) -> (i32, i32) {
    %c0_i32 = arith.constant 0 : i32
    %c0_i32_0 = arith.constant 0 : i32
    return %arg0, %c0_i32 : i32, i32
  }
  func.func @transform_1(%arg0: i32) -> (i32, i32) {
    %c0_i32 = arith.constant 0 : i32
    %c0_i32_0 = arith.constant 0 : i32
    %c0_i32_1 = arith.constant 0 : i32
    return %c0_i32, %c0_i32_0 : i32, i32
  }
  func.func @transform_2(%arg0: i32) -> (i32, i32) {
    %c0_i32 = arith.constant 0 : i32
    %c0_i32_0 = arith.constant 0 : i32
    return %arg0, %c0_i32 : i32, i32
  }
}

</mosaic_0001>

<bundles_post_ra>
// kernel: tpu_custom_call.1
= control target key start
LH: loop header
LB: loop body
LE: loop exit
PB: predicated region body
PF: predicated region fallthrough
CT: control target
= control target key end

     0   :  { %7 = vsyncpa [#allocation3], 0  ;;  %s312_s0 = inlined_call_operand.vmem [shape: s32[16,1], index: 0, kind: input, shape index: {}]   ;;  %s313_s1 = inlined_call_operand.hbm [shape: f32[64,128], index: 1, kind: input, shape index: {}]   ;;  %s314_s2 = inlined_call_operand.hbm [shape: f32[16,128], index: 2, kind: output, shape index: {}]  }
   0x1   :  { %8 = vsyncpa [#allocation4], 0  ;;  %s255_s9 = smov [#allocation2]   ;;  %s207_s13 = scalar_lea.hbm %s313_s1, 1024 }
   0x2   :  { %s16_s10 = sshll.u32 %s255_s9, 4  ;;  %p208_p0 = scmp.ne.s32.totalorder %s313_s1, %s207_s13  ;;  %s17_s10 = int_to_ptr.vmem [resolvable:$true] %s16_s10 }
   0x3   :  { %p211_p1 = scmp.lt.u32.totalorder %s207_s13, %s313_s1 }
   0x5   :  { %p213_p2 = pnand %p211_p1, %p208_p0 }
   0x7   :  { %216 = shalt.err (!%p213_p2)
}
   0x8   :  { %s217_s18 = scalar_lea.vmem %s17_s10, 1024  ;;  %p222_p4 = scmp.lt.s32.totalorder %s17_s10, %s17_s10 }
   0x9   :  { %p218_p3 = scmp.ne.s32.totalorder %s17_s10, %s217_s18  ;;  %p223_p5 = scmp.lt.s32.totalorder %s217_s18, %s217_s18 }
   0xb   :  { %p224_p6 = por %p223_p5, %p222_p4 }
   0xd   :  { %p225_p7 = pnand %p224_p6, %p218_p3 }
   0xf   :  { %228 = shalt.err (!%p225_p7)
}
  0x10   :  { %s256_s19 = smov 128   ;;  %s257_s20 = smov 8  }
  0x11   :  { %22 = dma.hbm_to_vmem [thread:$0]  %s313_s1, 1024, %s17_s10, [#allocation3], %s256_s19, %s256_s19, %s257_s20  }
  0x12   :  { %251 = dma.done.wait [#allocation3], 1024  }
  0x13   :  { %252 = vsyncadd [#allocation3], 4294966272  ;;  %v258_v0 = vmov 0   ;;  %v28_v1 = vld [vmem:[%s312_s0] sm:$0xff]  ;;  %v43_v3 = vld [vmem:[#allocation2 + $0x8] sm:$0xff]  ;;  %v26_v15 = vlaneseq  ;;  %vm50_vm0 = vcmask 523264  }
  0x14   :  { %206 = vset.pattern.permute.xlu0 %v258_v0  ;;  %v42_v2 = vld [vmem:[#allocation2] sm:$0xff]  ;;  %v44_v4 = vld [vmem:[#allocation2 + $0x10] sm:$0xff]  ;;  %v45_v5 = vld [vmem:[#allocation2 + $0x18] sm:$0xff]  ;;  %v259_v18 = vmov 0.0  }
  0x15   :  { %31 = vperm.xlu0 %206, %v28_v1   ;;  %v29_v6 = vld [vmem:[%s312_s0 + $0x8] sm:$0xff]  ;;  %v184_v7 = vpack.c.bf16 %v43_v3, %v42_v2  ;;  %v188_v8 = vpack.c.bf16 %v45_v5, %v44_v4  ;;  %v46_v9 = vld [vmem:[#allocation2 + $0x20] sm:$0xff]  ;;  %v48_v12 = vld [vmem:[#allocation2 + $0x30] sm:$0xff]  ;;  %v27_v16 = vand.u32 127, %v26_v15  ;;  %s260_s0 = smov [#allocation5]  }
  0x16   :  { %v47_v10 = vld [vmem:[#allocation2 + $0x28] sm:$0xff]  ;;  %v49_v13 = vld [vmem:[#allocation2 + $0x38] sm:$0xff]  ;;  %s139_s1 = sshll.u32 %s260_s0, 4  ;;  %s140_s1 = int_to_ptr.vmem [resolvable:$true] %s139_s1 }
  0x17   :  { %185 = vmatprep.subr.bf16.mxu0 %v184_v7  ;;  %v192_v11 = vpack.c.bf16 %v47_v10, %v46_v9  ;;  %v196_v14 = vpack.c.bf16 %v49_v13, %v48_v12  ;;  %s229_s27 = scalar_lea.vmem %s140_s1, 256  ;;  %p234_p9 = scmp.lt.s32.totalorder %s140_s1, %s140_s1 }
  0x18   :  { %187 = vmatpush3.bf16.msra.mxu0 %v184_v7  ;;  %p230_p8 = scmp.ne.s32.totalorder %s140_s1, %s229_s27  ;;  %p235_p10 = scmp.lt.s32.totalorder %s229_s27, %s229_s27 }
  0x19   :  { %34 = vperm.xlu0 %206, %v29_v6   ;;  %189 = vmatprep.subr.bf16.mxu0 %v188_v8 }
  0x1a   :  { %p236_p11 = por %p235_p10, %p234_p9 }
  0x1c   :  { %191 = vmatpush3.bf16.msra.mxu0 %v188_v8  ;;  %p237_p12 = pnand %p236_p11, %p230_p8 }
  0x1d   :  { %193 = vmatprep.subr.bf16.mxu0 %v192_v11 }
  0x20   :  { %195 = vmatpush3.bf16.msra.mxu0 %v192_v11 }
  0x21   :  { %197 = vmatprep.subr.bf16.mxu0 %v196_v14 }
  0x24   :  { %199 = vmatpush3.bf16.msra.mxu0 %v196_v14 }
  0x94   :  { %v32_v17 = vpop.permute.xlu0 %31 }
  0x95   :  { %vm36_vm1 = vcmp.eq.s32.totalorder %v27_v16, %v32_v17 }
  0x96   :  { %v151_v19 = vsel %vm36_vm1, 1.0, %v259_v18 }
  0x97   :  { %181 = vmatprep.mubr.msk.f32.mxu0 %vm50_vm0, %v151_v19 }
  0x98   :  { %v35_v20 = vpop.permute.xlu0 %34 }
  0x99   :  { %vm37_vm2 = vcmp.eq.s32.totalorder %v27_v16, %v35_v20 }
  0x9a   :  { %v152_v21 = vsel %vm37_vm2, 1.0, %v259_v18 }
  0x9b   :  { %182 = vmatmul.mubr.msk.f32.vlgmr.msra.gmra.mrb[0].mxu0 %vm50_vm0, %v152_v21 }
 0x16e   :  { %v183_v22 = vpop.f32.mrb[0].mxu0 }
 0x16f   :  { %133 = vst [vmem:[#allocation5 + $0x8] sm:$0xff] %v183_v22  ;;  %v123_v23 = vpop.f32.mrb[1].mxu0 }
 0x170   :  { %132 = vst [vmem:[#allocation5] sm:$0xff] %v123_v23 }
 0x171   :  { %240 = shalt.err (!%p237_p12)
}
 0x172   :  { %s241_s30 = scalar_lea.hbm %s314_s2, 256 }
 0x173   :  { %p242_p13 = scmp.ne.s32.totalorder %s314_s2, %s241_s30  ;;  %p245_p0 = scmp.lt.u32.totalorder %s241_s30, %s314_s2 }
 0x175   :  { %p247_p1 = pnand %p245_p0, %p242_p13 }
 0x177   :  { %250 = shalt.err (!%p247_p1)
}
 0x178   :  { %145 = dma.vmem_to_hbm [thread:$0]  %s140_s1, 256, %s314_s2, [#allocation4], %s256_s19, %s256_s19, %s257_s20  }
 0x179   :  { %253 = dma.done.wait [#allocation4], 256  }
 0x17a   :  { %254 = vsyncadd [#allocation4], 4294967040 }
 0x17b   :  { %149 = vsyncpa [#allocation3], 1 }
 0x17c   :  { %150 = vsyncpa [#allocation4], 1 }

</bundles_post_ra>
